<compile_context>
chip_gen: v7x
topology: tpu7x:2x2x1
jax: 0.10.0
libtpu: 0.0.40
codegen_flags: <defaults>
</compile_context>

<pallas_src>
from functools import partial

import jax
import jax.numpy as jnp
from jax import lax
from jax.experimental import pallas as pl
from jax.experimental.pallas import tpu as pltpu


def _group_norm_kernel(x_ref, w_ref, b_ref, y_ref, stat_ref, *, eps, n_elems):
    """One grid step over a batch-block.

    x_ref / y_ref : (Nb, G, Rp, L)  lane-dense rows, Rp % 8 == 0, L % 128 == 0;
                                    zero-padded rows/lanes are inert for stats.
    w_ref / b_ref : (G, Rp, 1)      per-row (== per-channel) affine params.
    stat_ref      : (Nb, G, 1, 2)   [..., 0] = mean, [..., 1] = unbiased var.
    """
    xf = x_ref[...].astype(jnp.float32)                      # (Nb, G, Rp, L)

    # Two-stage single-pass statistics:
    #   (a) reduce the row/sublane axis with plain VALU adds,
    #   (b) one cross-lane (XLU) reduce per (n, g).
    s_rows = jnp.sum(xf, axis=2, keepdims=True)              # (Nb, G, 1, L)
    ss_rows = jnp.sum(xf * xf, axis=2, keepdims=True)        # (Nb, G, 1, L)
    s = jnp.sum(s_rows, axis=3, keepdims=True)               # (Nb, G, 1, 1)
    ss = jnp.sum(ss_rows, axis=3, keepdims=True)             # (Nb, G, 1, 1)

    inv_n = 1.0 / n_elems
    inv_nm1 = 1.0 / max(n_elems - 1, 1)   # torch.var default: unbiased (n-1)
    mean = s * inv_n
    # E[x^2] - E[x]^2 is cancellation-prone and can go slightly negative;
    # clamp so rsqrt(var + eps) never sees var < -eps.
    var = jnp.maximum((ss - mean * s) * inv_nm1, 0.0)

    inv_std = lax.rsqrt(var + eps)                            # EUP, tiny

    # Fold normalization + affine into one per-row scale/shift:
    #   y = x * (w * inv_std) + (b - mean * w * inv_std)
    w = w_ref[...].astype(jnp.float32)[None]                  # (1, G, Rp, 1)
    b = b_ref[...].astype(jnp.float32)[None]                  # (1, G, Rp, 1)
    scale = w * inv_std                                       # (Nb, G, Rp, 1)
    shift = b - mean * scale                                  # (Nb, G, Rp, 1)

    y_ref[...] = (xf * scale + shift).astype(y_ref.dtype)     # mul + add only
    stat_ref[...] = jnp.concatenate([mean, var], axis=-1).astype(stat_ref.dtype)


def _hw_params():
    """Return (physical VMEM bytes, #TensorCores per chip) with safe fallbacks."""
    vmem_bytes = 64 << 20        # conservative default (v7x-sized VMEM)
    n_tc = 1
    try:
        vmem_bytes = int(pltpu.get_tpu_info().vmem_capacity_bytes)
    except Exception:
        pass
    try:
        if "v7" in jax.devices()[0].device_kind.lower():
            n_tc = 2             # v7x has two TensorCores per chip
    except Exception:
        pass
    return vmem_bytes, n_tc


def group_norm_moving_forward(x, weight, bias, num_groups, eps=1e-5):
    """x: (N, C, H, W); weight/bias: any shape reshapeable to (C,).

    Returns (y  (N,C,H,W),  mean (N,G,1),  var (N,G,1) unbiased)."""
    N, C, H, W = x.shape
    G = num_groups
    assert C % G == 0, "Channel must be divided by groups"
    Cg = C // G
    HW = H * W

    # ---- lane-dense layout -------------------------------------------------
    # Widest L in {512, 256, 128} that divides H*W; otherwise pad each
    # channel's H*W up to the next multiple of 128 with zeros.
    if HW % 512 == 0:
        L = 512
    elif HW % 256 == 0:
        L = 256
    else:
        L = 128
    rpc = -(-HW // L)              # rows per channel (ceil)
    HWp = rpc * L                  # padded per-channel spatial size
    R = Cg * rpc                   # real rows per group
    Rp = -(-R // 8) * 8            # sublane-aligned rows per group

    xg = x.reshape(N, G, Cg, HW)
    if HWp != HW:
        xg = jnp.pad(xg, ((0, 0), (0, 0), (0, 0), (0, HWp - HW)))
    xg = xg.reshape(N, G, R, L)
    if Rp != R:
        xg = jnp.pad(xg, ((0, 0), (0, 0), (0, Rp - R), (0, 0)))

    w_rows = jnp.repeat(jnp.asarray(weight, jnp.float32).reshape(G, Cg),
                        rpc, axis=1).reshape(G, R, 1)
    b_rows = jnp.repeat(jnp.asarray(bias, jnp.float32).reshape(G, Cg),
                        rpc, axis=1).reshape(G, R, 1)
    if Rp != R:
        w_rows = jnp.pad(w_rows, ((0, 0), (0, Rp - R), (0, 0)))
        b_rows = jnp.pad(b_rows, ((0, 0), (0, Rp - R), (0, 0)))

    # ---- VMEM-budgeted, generation-aware batch-block sizing -----------------
    vmem_phys, n_tc = _hw_params()
    vmem_limit = int(vmem_phys * 3 // 4)     # ~96 MiB v5e/v6e, ~48 MiB v7x
    # Budget in f32-equivalent bytes: the in/out streams are double-buffered
    # and the kernel holds f32 temporaries (cast, x*x, result) of block size,
    # so keep one block at <= 1/8 of the scoped limit.
    block_budget = max(vmem_limit // 8, 1 << 20)
    f32_bytes_per_elem = G * Rp * L * 4
    cap = max(1, min(N, block_budget // max(f32_bytes_per_elem, 1)))
    if n_tc > 1:
        # keep >= n_tc grid steps so the "parallel" axis can shard across TCs
        cap = min(cap, max(1, N // n_tc))
    Nb = max(d for d in range(1, cap + 1) if N % d == 0)
    # TODO(synk): if a single batch element's group data (G*Rp*L*4 bytes)
    # exceeds the block budget (very large C*H*W, especially on v7x's 64 MiB
    # VMEM), stream the reduction + normalization as a two-pass inner grid
    # axis with scratch accumulators instead of holding the group resident.

    kernel = partial(_group_norm_kernel, eps=float(eps), n_elems=Cg * HW)

    out_shapes = (
        jax.ShapeDtypeStruct((N, G, Rp, L), x.dtype),      # normalized output
        jax.ShapeDtypeStruct((N, G, 1, 2), jnp.float32),   # [mean, var]
    )

    y, stats = pl.pallas_call(
        kernel,
        out_shape=out_shapes,
        grid_spec=pltpu.PrefetchScalarGridSpec(
            num_scalar_prefetch=0,
            grid=(N // Nb,),
            in_specs=[
                pl.BlockSpec((Nb, G, Rp, L), lambda i: (i, 0, 0, 0)),
                # Constant block index -> weight/bias are DMA'd once and stay
                # VMEM-resident across all grid steps.
                pl.BlockSpec((G, Rp, 1), lambda i: (0, 0, 0)),
                pl.BlockSpec((G, Rp, 1), lambda i: (0, 0, 0)),
            ],
            out_specs=[
                pl.BlockSpec((Nb, G, Rp, L), lambda i: (i, 0, 0, 0)),
                pl.BlockSpec((Nb, G, 1, 2), lambda i: (i, 0, 0, 0)),
            ],
        ),
        compiler_params=pltpu.CompilerParams(
            dimension_semantics=("parallel",),
            vmem_limit_bytes=vmem_limit),
    )(xg, w_rows, b_rows)

    # Undo the layout padding (plain-JAX layout plumbing, no compute).
    y = (y[:, :, :R, :].reshape(N, G, Cg, HWp)[..., :HW]
         .reshape(N, C, H, W))
    mean = stats[..., 0]                        # (N, G, 1)
    var = stats[..., 1]                         # (N, G, 1), unbiased
    return y, mean, var


def _reference(x, weight, bias, num_groups, eps=1e-5):
    N, C, H, W = x.shape
    G = num_groups
    xg = x.reshape(N, G, -1)
    mean = jnp.mean(xg, axis=-1, keepdims=True)
    var = jnp.var(xg, axis=-1, keepdims=True, ddof=1)   # unbiased, like torch.var
    xn = (xg - mean) / jnp.sqrt(var + eps)
    y = xn.reshape(N, C, H, W)
    return (y * jnp.asarray(weight).reshape(1, C, 1, 1)
            + jnp.asarray(bias).reshape(1, C, 1, 1)), mean, var


if __name__ == "__main__":
    # Module config (synthetic, deterministic init — no checkpoint).
    num_groups = 2
    num_features = 4
    eps = 1e-5
    momentum = 1.0

    N, C, H, W = 2, num_features, 16, 16

    key = jax.random.PRNGKey(0)
    x = jax.random.normal(key, (N, C, H, W), dtype=jnp.float32)

    # Affine params as in the module: shape (1, C, 1, 1); reset_parameters()
    # gives weight=1, bias=0 — perturb deterministically so the broadcast path
    # is actually exercised.
    weight = (1.0 + 0.1 * jnp.arange(C, dtype=jnp.float32)).reshape(1, C, 1, 1)
    bias = (0.05 * jnp.arange(C, dtype=jnp.float32)).reshape(1, C, 1, 1)

    # Training-mode forward.
    y, mean, var = group_norm_moving_forward(x, weight, bias, num_groups, eps)
    jax.block_until_ready(y)

    # Running-stat buffer update glue (initial=True resets buffers, then
    # running = batch_stat*momentum + running*(1-momentum)).
    # TODO(synk): stateful buffer mutation / eval-mode branch live outside the kernel.
    running_mean = mean * momentum + jnp.zeros_like(mean) * (1.0 - momentum)
    running_var = var * momentum + jnp.ones_like(var) * (1.0 - momentum)
    jax.block_until_ready((running_mean, running_var))

    # Correctness check against plain-JAX reference of the PyTorch semantics.
    y_ref, mean_ref, var_ref = _reference(x, weight, bias, num_groups, eps)
    assert jnp.allclose(y, y_ref, atol=1e-5, rtol=1e-5), "output mismatch"
    assert jnp.allclose(mean, mean_ref, atol=1e-5, rtol=1e-5), "mean mismatch"
    assert jnp.allclose(var, var_ref, atol=1e-5, rtol=1e-5), "var mismatch"

    print("KERNEL_OK")
</pallas_src>

<mosaic_0001>
module attributes {stable_mosaic.version = 11 : i64} {
  func.func @_group_norm_kernel(%arg0: i32, %arg1: memref<2x2x8x256xf32, #tpu.memory_space<vmem>>, %arg2: memref<2x8x1xf32, #tpu.memory_space<vmem>>, %arg3: memref<2x8x1xf32, #tpu.memory_space<vmem>>, %arg4: memref<2x2x8x256xf32, #tpu.memory_space<vmem>>, %arg5: memref<2x2x1x2xf32, #tpu.memory_space<vmem>>) attributes {dimension_semantics = [#tpu.dimension_semantics<parallel>], iteration_bounds = array<i64: 1>, scalar_prefetch = 0 : i64, scratch_operands = 0 : i64, tpu.core_type = #tpu.core_type<tc>, window_params = [{transform_indices = @transform_0, window_bounds = array<i64: 2, 2, 8, 256>}, {pipeline_mode = #tpu.pipeline_mode<synchronous>, transform_indices = @transform_1, window_bounds = array<i64: 2, 8, 1>}, {pipeline_mode = #tpu.pipeline_mode<synchronous>, transform_indices = @transform_2, window_bounds = array<i64: 2, 8, 1>}, {transform_indices = @transform_3, window_bounds = array<i64: 2, 2, 8, 256>}, {transform_indices = @transform_4, window_bounds = array<i64: 2, 2, 1, 2>}]} {
    %c0 = arith.constant 0 : index
    %c0_0 = arith.constant 0 : index
    %c0_1 = arith.constant 0 : index
    %c0_2 = arith.constant 0 : index
    %0 = vector.load %arg1[%c0, %c0_0, %c0_1, %c0_2] : memref<2x2x8x256xf32, #tpu.memory_space<vmem>>, vector<2x2x8x256xf32>
    %cst = arith.constant dense<0.000000e+00> : vector<2x2x256xf32>
    %1 = vector.multi_reduction <add>, %0, %cst [2] : vector<2x2x8x256xf32> to vector<2x2x256xf32>
    %2 = vector.shape_cast %1 : vector<2x2x256xf32> to vector<2x2x1x256xf32>
    %3 = arith.mulf %0, %0 : vector<2x2x8x256xf32>
    %cst_3 = arith.constant dense<0.000000e+00> : vector<2x2x256xf32>
    %4 = vector.multi_reduction <add>, %3, %cst_3 [2] : vector<2x2x8x256xf32> to vector<2x2x256xf32>
    %5 = vector.shape_cast %4 : vector<2x2x256xf32> to vector<2x2x1x256xf32>
    %cst_4 = arith.constant dense<0.000000e+00> : vector<2x2x1xf32>
    %6 = vector.multi_reduction <add>, %2, %cst_4 [3] : vector<2x2x1x256xf32> to vector<2x2x1xf32>
    %7 = vector.shape_cast %6 : vector<2x2x1xf32> to vector<2x2x1x1xf32>
    %cst_5 = arith.constant dense<0.000000e+00> : vector<2x2x1xf32>
    %8 = vector.multi_reduction <add>, %5, %cst_5 [3] : vector<2x2x1x256xf32> to vector<2x2x1xf32>
    %9 = vector.shape_cast %8 : vector<2x2x1xf32> to vector<2x2x1x1xf32>
    %cst_6 = arith.constant 0.001953125 : f32
    %10 = vector.broadcast %cst_6 : f32 to vector<2x2x1x1xf32>
    %11 = arith.mulf %7, %10 : vector<2x2x1x1xf32>
    %12 = arith.mulf %11, %7 : vector<2x2x1x1xf32>
    %13 = arith.subf %9, %12 : vector<2x2x1x1xf32>
    %cst_7 = arith.constant 0.00195694715 : f32
    %14 = vector.broadcast %cst_7 : f32 to vector<2x2x1x1xf32>
    %15 = arith.mulf %13, %14 : vector<2x2x1x1xf32>
    %cst_8 = arith.constant 0.000000e+00 : f32
    %16 = vector.broadcast %cst_8 : f32 to vector<2x2x1x1xf32>
    %17 = arith.maximumf %15, %16 : vector<2x2x1x1xf32>
    %cst_9 = arith.constant 9.99999974E-6 : f32
    %18 = vector.broadcast %cst_9 : f32 to vector<2x2x1x1xf32>
    %19 = arith.addf %17, %18 : vector<2x2x1x1xf32>
    %20 = math.rsqrt %19 : vector<2x2x1x1xf32>
    %c0_10 = arith.constant 0 : index
    %c0_11 = arith.constant 0 : index
    %c0_12 = arith.constant 0 : index
    %21 = vector.load %arg2[%c0_10, %c0_11, %c0_12] : memref<2x8x1xf32, #tpu.memory_space<vmem>>, vector<2x8x1xf32>
    %22 = vector.shape_cast %21 : vector<2x8x1xf32> to vector<1x2x8x1xf32>
    %c0_13 = arith.constant 0 : index
    %c0_14 = arith.constant 0 : index
    %c0_15 = arith.constant 0 : index
    %23 = vector.load %arg3[%c0_13, %c0_14, %c0_15] : memref<2x8x1xf32, #tpu.memory_space<vmem>>, vector<2x8x1xf32>
    %24 = vector.shape_cast %23 : vector<2x8x1xf32> to vector<1x2x8x1xf32>
    %25 = vector.broadcast %22 : vector<1x2x8x1xf32> to vector<2x2x8x1xf32>
    %26 = vector.broadcast %20 : vector<2x2x1x1xf32> to vector<2x2x8x1xf32>
    %27 = arith.mulf %25, %26 : vector<2x2x8x1xf32>
    %28 = vector.broadcast %11 : vector<2x2x1x1xf32> to vector<2x2x8x1xf32>
    %29 = arith.mulf %28, %27 : vector<2x2x8x1xf32>
    %30 = vector.broadcast %24 : vector<1x2x8x1xf32> to vector<2x2x8x1xf32>
    %31 = arith.subf %30, %29 : vector<2x2x8x1xf32>
    %32 = vector.broadcast %27 : vector<2x2x8x1xf32> to vector<2x2x8x256xf32>
    %33 = arith.mulf %0, %32 : vector<2x2x8x256xf32>
    %34 = vector.broadcast %31 : vector<2x2x8x1xf32> to vector<2x2x8x256xf32>
    %35 = arith.addf %33, %34 : vector<2x2x8x256xf32>
    %c0_16 = arith.constant 0 : index
    %c0_17 = arith.constant 0 : index
    %c0_18 = arith.constant 0 : index
    %c0_19 = arith.constant 0 : index
    %36 = vector.load %arg4[%c0_16, %c0_17, %c0_18, %c0_19] : memref<2x2x8x256xf32, #tpu.memory_space<vmem>>, vector<2x2x8x256xf32>
    tpu.vector_store %arg4[%c0_16, %c0_17, %c0_18, %c0_19], %35 {strides = array<i32>} : memref<2x2x8x256xf32, #tpu.memory_space<vmem>>, vector<2x2x8x256xf32>,
    %37 = tpu.concatenate %11, %17 in 3 : vector<2x2x1x1xf32>, vector<2x2x1x1xf32> -> vector<2x2x1x2xf32>
    %c0_20 = arith.constant 0 : index
    %c0_21 = arith.constant 0 : index
    %c0_22 = arith.constant 0 : index
    %c0_23 = arith.constant 0 : index
    %38 = vector.load %arg5[%c0_20, %c0_21, %c0_22, %c0_23] : memref<2x2x1x2xf32, #tpu.memory_space<vmem>>, vector<2x2x1x2xf32>
    tpu.vector_store %arg5[%c0_20, %c0_21, %c0_22, %c0_23], %37 {strides = array<i32>} : memref<2x2x1x2xf32, #tpu.memory_space<vmem>>, vector<2x2x1x2xf32>,
    return
  }
  func.func @transform_0(%arg0: i32) -> (i32, i32, i32, i32) {
    %c0_i32 = arith.constant 0 : i32
    %c0_i32_0 = arith.constant 0 : i32
    %c0_i32_1 = arith.constant 0 : i32
    %c0_i32_2 = arith.constant 0 : i32
    return %arg0, %c0_i32, %c0_i32_0, %c0_i32_1 : i32, i32, i32, i32
  }
  func.func @transform_1(%arg0: i32) -> (i32, i32, i32) {
    %c0_i32 = arith.constant 0 : i32
    %c0_i32_0 = arith.constant 0 : i32
    %c0_i32_1 = arith.constant 0 : i32
    %c0_i32_2 = arith.constant 0 : i32
    return %c0_i32, %c0_i32_0, %c0_i32_1 : i32, i32, i32
  }
  func.func @transform_2(%arg0: i32) -> (i32, i32, i32) {
    %c0_i32 = arith.constant 0 : i32
    %c0_i32_0 = arith.constant 0 : i32
    %c0_i32_1 = arith.constant 0 : i32
    %c0_i32_2 = arith.constant 0 : i32
    return %c0_i32, %c0_i32_0, %c0_i32_1 : i32, i32, i32
  }
  func.func @transform_3(%arg0: i32) -> (i32, i32, i32, i32) {
    %c0_i32 = arith.constant 0 : i32
    %c0_i32_0 = arith.constant 0 : i32
    %c0_i32_1 = arith.constant 0 : i32
    %c0_i32_2 = arith.constant 0 : i32
    return %arg0, %c0_i32, %c0_i32_0, %c0_i32_1 : i32, i32, i32, i32
  }
  func.func @transform_4(%arg0: i32) -> (i32, i32, i32, i32) {
    %c0_i32 = arith.constant 0 : i32
    %c0_i32_0 = arith.constant 0 : i32
    %c0_i32_1 = arith.constant 0 : i32
    %c0_i32_2 = arith.constant 0 : i32
    return %arg0, %c0_i32, %c0_i32_0, %c0_i32_1 : i32, i32, i32, i32
  }
}

</mosaic_0001>

<bundles_post_ra>
// kernel: tpu_custom_call.1
= control target key start
LH: loop header
LB: loop body
LE: loop exit
PB: predicated region body
PF: predicated region fallthrough
CT: control target
= control target key end

     0   :  { %10 = vsyncpa [#allocation3], 0  ;;  %s560_s0 = inlined_call_operand.hbm [shape: f32[2,2,8,256], index: 0, kind: input, shape index: {}]   ;;  %s561_s1 = inlined_call_operand.vmem [shape: f32[2,8,1], index: 1, kind: input, shape index: {}]   ;;  %s562_s2 = inlined_call_operand.vmem [shape: f32[2,8,1], index: 2, kind: input, shape index: {}]   ;;  %s563_s3 = inlined_call_operand.hbm [shape: f32[2,2,8,256], index: 3, kind: output, shape index: {0}]   ;;  %s564_s4 = inlined_call_operand.hbm [shape: f32[2,2,1,2], index: 4, kind: output, shape index: {1}]  }
   0x1   :  { %11 = vsyncpa [#allocation4], 0 }
   0x2   :  { %12 = vsyncpa [#allocation7], 0  ;;  %s408_s15 = smov [#allocation2]   ;;  %s336_s19 = scalar_lea.hbm %s560_s0, 1024 }
   0x3   :  { %s18_s16 = sshll.u32 %s408_s15, 4  ;;  %p337_p0 = scmp.ne.s32.totalorder %s560_s0, %s336_s19  ;;  %s19_s16 = int_to_ptr.vmem [resolvable:$true] %s18_s16 }
   0x4   :  { %p340_p1 = scmp.lt.u32.totalorder %s336_s19, %s560_s0 }
   0x6   :  { %p342_p2 = pnand %p340_p1, %p337_p0 }
   0x8   :  { %345 = shalt.err (!%p342_p2)
}
   0x9   :  { %s346_s24 = scalar_lea.vmem %s19_s16, 1024  ;;  %p351_p4 = scmp.lt.s32.totalorder %s19_s16, %s19_s16 }
   0xa   :  { %p347_p3 = scmp.ne.s32.totalorder %s19_s16, %s346_s24  ;;  %p352_p5 = scmp.lt.s32.totalorder %s346_s24, %s346_s24 }
   0xc   :  { %p353_p6 = por %p352_p5, %p351_p4 }
   0xe   :  { %p354_p7 = pnand %p353_p6, %p347_p3 }
  0x10   :  { %357 = shalt.err (!%p354_p7)
}
  0x11   :  { %s409_s25 = smov 256   ;;  %s410_s26 = smov 16  }
  0x12   :  { %24 = dma.hbm_to_vmem [thread:$0]  %s560_s0, 1024, %s19_s16, [#allocation3], %s409_s25, %s409_s25, %s410_s26  }
  0x13   :  { %402 = dma.done.wait [#allocation3], 1024  }
  0x14   :  { %403 = vsyncadd [#allocation3], 4294966272  ;;  %v455_v0 = vld [vmem:[#allocation2 + $0x20] sm:$0xff]  ;;  %v457_v1 = vld [vmem:[#allocation2 + $0x28] sm:$0xff]  ;;  %vm276_vm0 = vcmask 7168   ;;  %vm281_vm1 = vcmask 8192  }
  0x15   :  { %v459_v2 = vld [vmem:[#allocation2] sm:$0xff]  ;;  %v64_v3 = vrot.slane %v455_v0, 4  ;;  %v70_v4 = vrot.slane %v457_v1, 4  ;;  %v463_v5 = vld [vmem:[#allocation2 + $0x8] sm:$0xff]  ;;  %v466_v7 = vld [vmem:[#allocation2 + $0x30] sm:$0xff]  ;;  %s412_s9 = smov [#allocation6]  }
  0x16   :  { %v40_v6 = vrot.slane %v459_v2, 4  ;;  %v468_v8 = vld [vmem:[#allocation2 + $0x38] sm:$0xff]  ;;  %v88_v9 = vmul.f32 %v459_v2, %v459_v2  ;;  %v46_v10 = vrot.slane %v463_v5, 4  ;;  %v76_v11 = vrot.slane %v466_v7, 4  ;;  %v475_v13 = vld [vmem:[#allocation2 + $0x10] sm:$0xff]  ;;  %s303_s10 = sshll.u32 %s412_s9, 4  ;;  %s304_s10 = int_to_ptr.vmem [resolvable:$true] %s303_s10 }
  0x17   :  { %v82_v12 = vrot.slane %v468_v8, 4  ;;  %v477_v14 = vld [vmem:[#allocation2 + $0x18] sm:$0xff]  ;;  %v89_v15 = vmul.f32 %v463_v5, %v463_v5  ;;  %v65_v16 = vadd.f32 %v64_v3, %v455_v0  ;;  %v71_v17 = vadd.f32 %v70_v4, %v457_v1  ;;  %s358_s11 = scalar_lea.vmem %s304_s10, 64  ;;  %p363_p9 = scmp.lt.s32.totalorder %s304_s10, %s304_s10 }
  0x18   :  { %v41_v18 = vadd.f32 %v40_v6, %v459_v2  ;;  %v52_v19 = vrot.slane %v475_v13, 4  ;;  %v47_v20 = vadd.f32 %v46_v10, %v463_v5  ;;  %v77_v21 = vadd.f32 %v76_v11, %v466_v7  ;;  %p359_p8 = scmp.ne.s32.totalorder %s304_s10, %s358_s11  ;;  %p364_p10 = scmp.lt.s32.totalorder %s358_s11, %s358_s11 }
  0x19   :  { %v83_v22 = vadd.f32 %v82_v12, %v468_v8  ;;  %v58_v23 = vrot.slane %v477_v14, 4  ;;  %v66_v24 = vrot.slane %v65_v16, 2  ;;  %v72_v25 = vrot.slane %v71_v17, 2 }
  0x1a   :  { %v42_v26 = vrot.slane %v41_v18, 2  ;;  %v53_v27 = vadd.f32 %v52_v19, %v475_v13  ;;  %v48_v28 = vrot.slane %v47_v20, 2  ;;  %v78_v29 = vrot.slane %v77_v21, 2  ;;  %p365_p11 = por %p364_p10, %p363_p9 }
  0x1b   :  { %v84_v30 = vrot.slane %v83_v22, 2  ;;  %v59_v31 = vadd.f32 %v58_v23, %v477_v14  ;;  %v67_v32 = vadd.f32 %v66_v24, %v65_v16  ;;  %v73_v33 = vadd.f32 %v72_v25, %v71_v17 }
  0x1c   :  { %v43_v34 = vadd.f32 %v42_v26, %v41_v18  ;;  %v54_v35 = vrot.slane %v53_v27, 2  ;;  %v49_v36 = vadd.f32 %v48_v28, %v47_v20  ;;  %v79_v37 = vadd.f32 %v78_v29, %v77_v21  ;;  %p366_p12 = pnand %p365_p11, %p359_p8 }
  0x1d   :  { %v85_v38 = vadd.f32 %v84_v30, %v83_v22  ;;  %v60_v39 = vrot.slane %v59_v31, 2  ;;  %v68_v40 = vrot.slane %v67_v32, 1  ;;  %v74_v41 = vrot.slane %v73_v33, 1 }
  0x1e   :  { %v44_v42 = vrot.slane %v43_v34, 1  ;;  %v55_v43 = vadd.f32 %v54_v35, %v53_v27  ;;  %v50_v44 = vrot.slane %v49_v36, 1  ;;  %v80_v45 = vrot.slane %v79_v37, 1 }
  0x1f   :  { %v86_v46 = vrot.slane %v85_v38, 1  ;;  %v61_v47 = vadd.f32 %v60_v39, %v59_v31  ;;  %v69_v48 = vadd.f32 %v68_v40, %v67_v32  ;;  %v75_v49 = vadd.f32 %v74_v41, %v73_v33 }
  0x20   :  { %v45_v50 = vadd.f32 %v44_v42, %v43_v34  ;;  %v56_v51 = vrot.slane %v55_v43, 1  ;;  %v51_v52 = vadd.f32 %v50_v44, %v49_v36  ;;  %v81_v53 = vadd.f32 %v80_v45, %v79_v37 }
  0x21   :  { %v87_v54 = vadd.f32 %v86_v46, %v85_v38  ;;  %v62_v55 = vrot.slane %v61_v47, 1  ;;  %v150_v56 = vadd.f32 %v75_v49, %v69_v48  ;;  %v90_v58 = vmul.f32 %v475_v13, %v475_v13 }
  0x22   :  { %v57_v57 = vadd.f32 %v56_v51, %v55_v43  ;;  %v91_v59 = vmul.f32 %v477_v14, %v477_v14  ;;  %v144_v60 = vadd.f32 %v51_v52, %v45_v50  ;;  %v96_v63 = vrot.slane %v88_v9, 4 }
  0x23   :  { %v153_v61 = vadd.f32 %v87_v54, %v81_v53  ;;  %v63_v62 = vadd.f32 %v62_v55, %v61_v47  ;;  %151 = vadd.xlane.f32.xlu1 %v150_v56  ;;  %v108_v3 = vrot.slane %v90_v58, 4  ;;  %v102_v6 = vrot.slane %v89_v15, 4 }
  0x24   :  { %v114_v4 = vrot.slane %v91_v59, 4  ;;  %v94_v10 = vmul.f32 %v466_v7, %v466_v7  ;;  %145 = vadd.xlane.f32.xlu0 %v144_v60  ;;  %v97_v12 = vadd.f32 %v96_v63, %v88_v9  ;;  %v95_v16 = vmul.f32 %v468_v8, %v468_v8 }
  0x25   :  { %v147_v11 = vadd.f32 %v63_v62, %v57_v57  ;;  %v92_v17 = vmul.f32 %v455_v0, %v455_v0  ;;  %v109_v18 = vadd.f32 %v108_v3, %v90_v58  ;;  %v103_v20 = vadd.f32 %v102_v6, %v89_v15 }
  0x26   :  { %v115_v19 = vadd.f32 %v114_v4, %v91_v59  ;;  %v132_v21 = vrot.slane %v94_v10, 4  ;;  %v98_v22 = vrot.slane %v97_v12, 2  ;;  %v138_v23 = vrot.slane %v95_v16, 4 }
  0x27   :  { %v93_v24 = vmul.f32 %v457_v1, %v457_v1  ;;  %v120_v25 = vrot.slane %v92_v17, 4  ;;  %154 = vadd.xlane.f32.xlu1 %v153_v61  ;;  %v110_v26 = vrot.slane %v109_v18, 2  ;;  %v104_v9 = vrot.slane %v103_v20, 2 }
  0x28   :  { %v116_v27 = vrot.slane %v115_v19, 2  ;;  %v133_v28 = vadd.f32 %v132_v21, %v94_v10  ;;  %148 = vadd.xlane.f32.xlu0 %v147_v11  ;;  %v99_v29 = vadd.f32 %v98_v22, %v97_v12  ;;  %v139_v30 = vadd.f32 %v138_v23, %v95_v16 }
  0x29   :  { %v121_v31 = vadd.f32 %v120_v25, %v92_v17  ;;  %v126_v32 = vrot.slane %v93_v24, 4  ;;  %v111_v33 = vadd.f32 %v110_v26, %v109_v18  ;;  %v105_v15 = vadd.f32 %v104_v9, %v103_v20 }
  0x2a   :  { %v117_v34 = vadd.f32 %v116_v27, %v115_v19  ;;  %v134_v35 = vrot.slane %v133_v28, 2  ;;  %v100_v36 = vrot.slane %v99_v29, 1  ;;  %v140_v37 = vrot.slane %v139_v30, 2 }
  0x2b   :  { %v122_v38 = vrot.slane %v121_v31, 2  ;;  %v127_v39 = vadd.f32 %v126_v32, %v93_v24  ;;  %v112_v40 = vrot.slane %v111_v33, 1  ;;  %v106_v42 = vrot.slane %v105_v15, 1 }
  0x2c   :  { %v118_v41 = vrot.slane %v117_v34, 1  ;;  %v135_v43 = vadd.f32 %v134_v35, %v133_v28  ;;  %v101_v44 = vadd.f32 %v100_v36, %v99_v29  ;;  %v141_v45 = vadd.f32 %v140_v37, %v139_v30 }
  0x2d   :  { %v123_v46 = vadd.f32 %v122_v38, %v121_v31  ;;  %v128_v47 = vrot.slane %v127_v39, 2  ;;  %v113_v48 = vadd.f32 %v112_v40, %v111_v33  ;;  %v107_v50 = vadd.f32 %v106_v42, %v105_v15 }
  0x2e   :  { %v119_v49 = vadd.f32 %v118_v41, %v117_v34  ;;  %v136_v51 = vrot.slane %v135_v43, 1  ;;  %v142_v52 = vrot.slane %v141_v45, 1  ;;  %v411_v3 = vmov 0  }
  0x2f   :  { %v124_v53 = vrot.slane %v123_v46, 1  ;;  %v129_v54 = vadd.f32 %v128_v47, %v127_v39  ;;  %v156_v56 = vadd.f32 %v107_v50, %v101_v44  ;;  %327 = vset.pattern.permute.xlu1 %v411_v3  ;;  %326 = vset.pattern.permute.xlu0 %v411_v3 }
  0x30   :  { %v159_v55 = vadd.f32 %v119_v49, %v113_v48  ;;  %v137_v57 = vadd.f32 %v136_v51, %v135_v43  ;;  %v143_v58 = vadd.f32 %v142_v52, %v141_v45  ;;  %v197_v45 = vld [vmem:[%s561_s1 + $0x8] sm:$0xff] }
  0x31   :  { %v125_v59 = vadd.f32 %v124_v53, %v123_v46  ;;  %v130_v60 = vrot.slane %v129_v54, 1  ;;  %157 = vadd.xlane.f32.xlu0 %v156_v56  ;;  %v196_v46 = vld [vmem:[%s561_s1] sm:$0xff] }
  0x32   :  { %160 = vadd.xlane.f32.xlu1 %v159_v55  ;;  %v165_v61 = vadd.f32 %v143_v58, %v137_v57  ;;  %v198_v56 = vld [vmem:[%s562_s2] sm:$0xff] }
  0x33   :  { %v131_v62 = vadd.f32 %v130_v60, %v129_v54 }
  0x35   :  { %v162_v63 = vadd.f32 %v131_v62, %v125_v59  ;;  %v199_v59 = vld [vmem:[%s562_s2 + $0x8] sm:$0xff] }
  0x36   :  { %166 = vadd.xlane.f32.xlu1 %v165_v61 }
  0x37   :  { %163 = vadd.xlane.f32.xlu0 %v162_v63 }
  0xb0   :  { %v152_v6 = vpop.xlane.xlu1 %151 }
  0xb1   :  { %v146_v4 = vpop.xlane.xlu0 %145  ;;  %v170_v20 = vmul.f32 0.001953125, %v152_v6 }
  0xb2   :  { %v168_v16 = vmul.f32 0.001953125, %v146_v4 }
  0xb3   :  { %v174_v9 = vmul.f32 %v170_v20, %v152_v6 }
  0xb4   :  { %v155_v12 = vpop.xlane.xlu1 %154  ;;  %v172_v18 = vmul.f32 %v168_v16, %v146_v4 }
  0xb5   :  { %v149_v10 = vpop.xlane.xlu0 %148  ;;  %v171_v19 = vmul.f32 0.001953125, %v155_v12 }
  0xb6   :  { %v169_v11 = vmul.f32 0.001953125, %v149_v10 }
  0xb7   :  { %v175_v25 = vmul.f32 %v171_v19, %v155_v12 }
  0xb8   :  { %v173_v17 = vmul.f32 %v169_v11, %v149_v10 }
  0xbe   :  { %v158_v22 = vpop.xlane.xlu0 %157 }
  0xbf   :  { %v161_v21 = vpop.xlane.xlu1 %160  ;;  %v176_v24 = vsub.f32 %v158_v22, %v172_v18 }
  0xc0   :  { %v177_v23 = vsub.f32 %v161_v21, %v173_v17 }
  0xc1   :  { %v180_v27 = vmul.f32 0.0019569471, %v176_v24 }
  0xc2   :  { %v181_v26 = vmul.f32 0.0019569471, %v177_v23 }
  0xc3   :  { %v167_v28 = vpop.xlane.xlu1 %166  ;;  %v184_v30 = vmax.f32 %v180_v27, 0.0 }
  0xc4   :  { %v185_v29 = vmax.f32 %v181_v26, 0.0  ;;  %v179_v31 = vsub.f32 %v167_v28, %v175_v25  ;;  %v164_v32 = vpop.xlane.xlu0 %163 }
  0xc5   :  { %v178_v33 = vsub.f32 %v164_v32, %v174_v9  ;;  %v188_v35 = vadd.f32 1e-05, %v184_v30  ;;  %v277_v36 = vsel %vm276_vm0, %v168_v16, %v184_v30 }
  0xc6   :  { %v189_v34 = vadd.f32 1e-05, %v185_v29  ;;  %v278_v15 = vsel %vm276_vm0, %v169_v11, %v185_v29  ;;  %282 = vst.msk [vmem:[#allocation6] sm:$0x1] %vm281_vm1, %v277_v36  ;;  %v183_v37 = vmul.f32 0.0019569471, %v179_v31 }
  0xc7   :  { %283 = vst.msk [vmem:[#allocation6 + $0x1] sm:$0x1] %vm281_vm1, %v278_v15  ;;  %v182_v38 = vmul.f32 0.0019569471, %v178_v33 }
  0xc8   :  { %328 = vrsqrt.f32 %v189_v34  ;;  %v187_v39 = vmax.f32 %v183_v37, 0.0 }
  0xc9   :  { %330 = vrsqrt.f32 %v188_v35  ;;  %v186_v40 = vmax.f32 %v182_v38, 0.0 }
  0xca   :  { %v280_v41 = vsel %vm276_vm0, %v171_v19, %v187_v39  ;;  %v191_v44 = vadd.f32 1e-05, %v187_v39 }
  0xcb   :  { %v190_v42 = vadd.f32 1e-05, %v186_v40  ;;  %v279_v43 = vsel %vm276_vm0, %v170_v20, %v186_v40  ;;  %285 = vst.msk [vmem:[#allocation6 + $0x3] sm:$0x1] %vm281_vm1, %v280_v41 }
  0xcc   :  { %284 = vst.msk [vmem:[#allocation6 + $0x2] sm:$0x1] %vm281_vm1, %v279_v43 }
  0xcd   :  { %332 = vrsqrt.f32 %v190_v42 }
  0xce   :  { %334 = vrsqrt.f32 %v191_v44 }
  0xd2   :  { %v329_v47 = vpop.eup %328 }
  0xd3   :  { %v331_v48 = vpop.eup %330  ;;  %v201_v49 = vmul.f32 %v329_v47, %v197_v45 }
  0xd4   :  { %v200_v50 = vmul.f32 %v331_v48, %v196_v46 }
  0xd5   :  { %219 = vperm.xlu1 %327, %v201_v49   ;;  %v205_v58 = vmul.f32 %v201_v49, %v169_v11 }
  0xd6   :  { %214 = vperm.xlu0 %326, %v200_v50   ;;  %v204_v55 = vmul.f32 %v200_v50, %v168_v16 }
  0xd7   :  { %v333_v51 = vpop.eup %332  ;;  %v209_v60 = vsub.f32 %v199_v59, %v205_v58 }
  0xd8   :  { %v202_v52 = vmul.f32 %v333_v51, %v196_v46  ;;  %v335_v53 = vpop.eup %334  ;;  %v208_v57 = vsub.f32 %v198_v56, %v204_v55 }
  0xd9   :  { %v203_v54 = vmul.f32 %v335_v53, %v197_v45 }
  0xda   :  { %224 = vperm.xlu1 %327, %v202_v52   ;;  %v206_v61 = vmul.f32 %v202_v52, %v170_v20 }
  0xdb   :  { %v207_v63 = vmul.f32 %v203_v54, %v171_v19 }
  0xdc   :  { %v210_v62 = vsub.f32 %v198_v56, %v206_v61 }
  0xdd   :  { %v211_v3 = vsub.f32 %v199_v59, %v207_v63 }
  0xde   :  { %229 = vperm.xlu1 %327, %v203_v54  }
  0xe2   :  { %242 = vperm.xlu1 %327, %v208_v57  }
  0xe6   :  { %247 = vperm.xlu1 %327, %v209_v60  }
  0xea   :  { %252 = vperm.xlu1 %327, %v210_v62  }
  0xee   :  { %257 = vperm.xlu1 %327, %v211_v3  }
  0xef   :  { %369 = shalt.err (!%p366_p12)
}
  0xf0   :  { %s370_s13 = scalar_lea.hbm %s564_s4, 64 }
  0xf1   :  { %p371_p13 = scmp.ne.s32.totalorder %s564_s4, %s370_s13  ;;  %p374_p0 = scmp.lt.u32.totalorder %s370_s13, %s564_s4 }
  0xf3   :  { %p376_p1 = pnand %p374_p0, %p371_p13 }
  0xf5   :  { %379 = shalt.err (!%p376_p1)
}
  0xf6   :  { %s413_s18 = smov 1  }
  0xf7   :  { %309 = dma.vmem_to_hbm [thread:$0]  %s304_s10, 64, %s564_s4, [#allocation7], %s410_s26, %s410_s26, %s413_s18  }
  0xf8   :  { %s414_s4 = smov [#allocation5]  }
  0xf9   :  { %s291_s21 = sshll.u32 %s414_s4, 4  ;;  %s292_s21 = int_to_ptr.vmem [resolvable:$true] %s291_s21 }
  0xfa   :  { %s380_s22 = scalar_lea.vmem %s292_s21, 1024  ;;  %p385_p3 = scmp.lt.s32.totalorder %s292_s21, %s292_s21 }
  0xfb   :  { %p381_p2 = scmp.ne.s32.totalorder %s292_s21, %s380_s22  ;;  %p386_p4 = scmp.lt.s32.totalorder %s380_s22, %s380_s22 }
  0xfd   :  { %p387_p5 = por %p386_p4, %p385_p3 }
  0xff   :  { %p388_p6 = pnand %p387_p5, %p381_p2 }
 0x154   :  { %v220_v4 = vpop.permute.xlu1 %219 }
 0x155   :  { %v215_v10 = vpop.permute.xlu0 %214  ;;  %v234_v20 = vmul.f32 %v220_v4, %v475_v13  ;;  %v235_v21 = vmul.f32 %v220_v4, %v477_v14 }
 0x156   :  { %v232_v12 = vmul.f32 %v215_v10, %v459_v2  ;;  %v233_v16 = vmul.f32 %v215_v10, %v463_v5 }
 0x159   :  { %v225_v6 = vpop.permute.xlu1 %224 }
 0x15a   :  { %v236_v25 = vmul.f32 %v225_v6, %v455_v0  ;;  %v237_v26 = vmul.f32 %v225_v6, %v457_v1 }
 0x15d   :  { %v230_v11 = vpop.permute.xlu1 %229 }
 0x15e   :  { %v238_v13 = vmul.f32 %v230_v11, %v466_v7  ;;  %v239_v14 = vmul.f32 %v230_v11, %v468_v8 }
 0x161   :  { %v243_v17 = vpop.permute.xlu1 %242 }
 0x162   :  { %v260_v18 = vadd.f32 %v243_v17, %v232_v12  ;;  %v261_v19 = vadd.f32 %v243_v17, %v233_v16 }
 0x164   :  { %268 = vst [vmem:[#allocation5] sm:$0xff] %v260_v18  ;;  %269 = vst [vmem:[#allocation5 + $0x8] sm:$0xff] %v261_v19 }
 0x165   :  { %v248_v22 = vpop.permute.xlu1 %247 }
 0x166   :  { %v262_v23 = vadd.f32 %v248_v22, %v234_v20  ;;  %v263_v24 = vadd.f32 %v248_v22, %v235_v21 }
 0x168   :  { %270 = vst [vmem:[#allocation5 + $0x10] sm:$0xff] %v262_v23  ;;  %271 = vst [vmem:[#allocation5 + $0x18] sm:$0xff] %v263_v24 }
 0x169   :  { %v253_v2 = vpop.permute.xlu1 %252 }
 0x16a   :  { %v264_v5 = vadd.f32 %v253_v2, %v236_v25  ;;  %v265_v27 = vadd.f32 %v253_v2, %v237_v26 }
 0x16c   :  { %272 = vst [vmem:[#allocation5 + $0x20] sm:$0xff] %v264_v5  ;;  %273 = vst [vmem:[#allocation5 + $0x28] sm:$0xff] %v265_v27 }
 0x16d   :  { %v258_v9 = vpop.permute.xlu1 %257 }
 0x16e   :  { %v266_v28 = vadd.f32 %v258_v9, %v238_v13  ;;  %v267_v29 = vadd.f32 %v258_v9, %v239_v14 }
 0x170   :  { %274 = vst [vmem:[#allocation5 + $0x30] sm:$0xff] %v266_v28  ;;  %275 = vst [vmem:[#allocation5 + $0x38] sm:$0xff] %v267_v29 }
 0x171   :  { %391 = shalt.err (!%p388_p6)
}
 0x172   :  { %s392_s27 = scalar_lea.hbm %s563_s3, 1024 }
 0x173   :  { %p393_p7 = scmp.ne.s32.totalorder %s563_s3, %s392_s27  ;;  %p396_p8 = scmp.lt.u32.totalorder %s392_s27, %s563_s3 }
 0x175   :  { %p398_p9 = pnand %p396_p8, %p393_p7 }
 0x177   :  { %401 = shalt.err (!%p398_p9)
}
 0x178   :  { %297 = dma.vmem_to_hbm [thread:$0]  %s292_s21, 1024, %s563_s3, [#allocation4], %s409_s25, %s409_s25, %s410_s26  }
 0x179   :  { %404 = dma.done.wait [#allocation4], 1024  }
 0x17a   :  { %405 = vsyncadd [#allocation4], 4294966272 }
 0x17b   :  { %406 = dma.done.wait [#allocation7], 64  }
 0x17c   :  { %407 = vsyncadd [#allocation7], 4294967232 }
 0x17d   :  { %316 = vsyncpa [#allocation3], 1 }
 0x17e   :  { %317 = vsyncpa [#allocation4], 1 }
 0x17f   :  { %318 = vsyncpa [#allocation7], 1 }

</bundles_post_ra>
